<compile_context>
chip_gen: v7x
topology: tpu7x:2x2x1
jax: 0.10.0
libtpu: 0.0.40
codegen_flags: <defaults>
</compile_context>

<pallas_src>
import functools

import numpy as np
import jax
import jax.numpy as jnp
from jax import lax
from jax.experimental import pallas as pl
from jax.experimental.pallas import tpu as pltpu

OMEGA0 = 10.0   # nn.Parameter(omega0 * ones(1), trainable=False) -> baked constant
SIGMA0 = 40.0   # nn.Parameter(sigma0 * ones(1), trainable=False) -> baked constant

# Cody-Waite split of pi/2 (f32-exact pieces) and Cephes single-precision minimax
# coefficients on [-pi/4, pi/4].
_TWO_OVER_PI = 0.6366197723675814
_PIO2_HI = 1.5703125
_PIO2_MID = 4.837512969970703125e-4
_PIO2_LO = 7.54978995489188216e-8
_SIN_C1, _SIN_C2, _SIN_C3 = -1.6666654611e-1, 8.3321608736e-3, -1.9515295891e-4
_COS_C1, _COS_C2, _COS_C3 = 4.166664568298827e-2, -1.388731625493765e-3, 2.443315711809948e-5


def _round_up(x, m):
    return ((x + m - 1) // m) * m


def _sincos(x):
    """sin(x), cos(x) sharing ONE range reduction (VALU polynomial work).

    jnp.sin / jnp.cos each lower to their own range reduction + polynomial on the
    VPU (the EUP only covers exp/recip/tanh/rsqrt); sharing the reduction roughly
    halves the phase-path VALU ops.  Accurate for the moderate |omega0*Re(lin)|
    arguments a WIRE layer produces.
    """
    kf = jnp.floor(x * _TWO_OVER_PI + 0.5)        # nearest-int quadrant index
    k = kf.astype(jnp.int32)
    r = x - kf * _PIO2_HI                         # Cody-Waite: x - k*pi/2
    r = r - kf * _PIO2_MID
    r = r - kf * _PIO2_LO
    r2 = r * r
    sin_r = r + r * r2 * (_SIN_C1 + r2 * (_SIN_C2 + r2 * _SIN_C3))
    cos_r = 1.0 - 0.5 * r2 + r2 * r2 * (_COS_C1 + r2 * (_COS_C2 + r2 * _COS_C3))
    swap = (k & 1) == 1                           # odd quadrant -> swap sin/cos
    s = jnp.where(swap, cos_r, sin_r)
    c = jnp.where(swap, sin_r, cos_r)
    s = jnp.where((k & 2) == 2, -s, s)            # quadrants 2,3 negate sin
    c = jnp.where(((k + 1) & 2) == 2, -c, c)      # quadrants 1,2 negate cos
    return s, c


def _wire_kernel(x2_ref, w2_ref, b2_ref, out_ref, *, out_pad, omega0, sigma0_sq):
    # Single fused complex matmul on the MXU (bf16 operands, f32 accumulation):
    #   [Re(lin) | Im(lin)] = [xr | xi] @ [[wr, wi], [-wi, wr]] + [br | bi]
    lin = jnp.dot(x2_ref[...], w2_ref[...],
                  preferred_element_type=jnp.float32) + b2_ref[...]
    lin_re = lin[:, :out_pad]                     # 128-aligned lane slices
    lin_im = lin[:, out_pad:]

    # Gabor nonlinearity: exp(1j*omega0*lin - |sigma0*lin|^2)  (epilogue in f32)
    abs2 = lin_re * lin_re + lin_im * lin_im
    mag = jnp.exp(-omega0 * lin_im - sigma0_sq * abs2)   # EUP
    s, c = _sincos(omega0 * lin_re)                      # shared VALU sincos
    out_ref[:, :out_pad] = mag * c                       # Re(out)
    out_ref[:, out_pad:] = mag * s                       # Im(out)


def pack_wire_weights(weight, bias, *, in_pad=None, bf16_matmul=True):
    """Pack complex64 nn.Linear params into real MXU planes (do ONCE per layer).

    Returns (w2, b2, out_pad):
      w2: (2*in_pad, 2*out_pad) = [[wr, wi], [-wi, wr]]  bf16 (or f32)
      b2: (1, 2*out_pad)        = [br | bi]              f32
    Rows >= in_size are zero, so when chaining packed planes between stacked WIRE
    layers the previous layer's padded output columns are annihilated.
    """
    out_size, in_size = weight.shape
    in_pad = in_size if in_pad is None else in_pad
    out_pad = _round_up(out_size, 128)
    wdt = jnp.bfloat16 if bf16_matmul else jnp.float32

    wr = jnp.pad(jnp.real(weight).T.astype(jnp.float32),
                 ((0, in_pad - in_size), (0, out_pad - out_size)))
    wi = jnp.pad(jnp.imag(weight).T.astype(jnp.float32),
                 ((0, in_pad - in_size), (0, out_pad - out_size)))
    w2 = jnp.concatenate(
        [jnp.concatenate([wr, wi], axis=1),
         jnp.concatenate([-wi, wr], axis=1)], axis=0).astype(wdt)

    br = jnp.pad(jnp.real(bias).astype(jnp.float32), (0, out_pad - out_size))
    bi = jnp.pad(jnp.imag(bias).astype(jnp.float32), (0, out_pad - out_size))
    b2 = jnp.concatenate([br, bi]).reshape(1, 2 * out_pad)
    return w2, b2, out_pad


def complex_wire_planes(x2, w2, b2, *, omega0=OMEGA0, sigma0=SIGMA0, tm=1024):
    """Packed-plane ComplexWIRE: x2 (N, 2*in_pad) [re|im] -> (N, 2*out_pad) f32 [re|im].

    Chainable form: stacked WIRE layers should stay in this representation (with
    pack_wire_weights(in_pad=prev_out_pad)) and only recombine to complex64 at the end.
    """
    n, in2 = x2.shape
    out2 = w2.shape[1]
    out_pad = out2 // 2

    # Row tiling: even tile count (balances the two v7x TensorCores under the
    # "parallel" grid axis) and rebalanced tm so ragged-N tail padding stays tiny.
    tm_cap = max(8, min(int(tm), _round_up(n, 8)))
    num_tiles = -(-n // tm_cap)
    if num_tiles > 1 and num_tiles % 2 == 1:
        num_tiles += 1
    tm_eff = _round_up(-(-n // num_tiles), 8)
    n_pad = num_tiles * tm_eff
    if n_pad != n:
        x2 = jnp.pad(x2, ((0, n_pad - n), (0, 0)))

    # Double-buffered x/out tiles + resident weights/bias (worst-case 2 buffers).
    vmem_need = (2 * tm_eff * in2 * x2.dtype.itemsize
                 + 2 * tm_eff * out2 * 4
                 + 2 * in2 * out2 * w2.dtype.itemsize
                 + 2 * out2 * 4)
    vmem_limit = int(min(max(vmem_need + (vmem_need >> 2) + (2 << 20), 32 << 20),
                         64 << 20))

    cost = pl.CostEstimate(
        flops=int(2 * n_pad * in2 * out2 + 14 * n_pad * out2),
        transcendentals=int(n_pad * out_pad),            # exp only; sincos is VALU
        bytes_accessed=int(n_pad * in2 * x2.dtype.itemsize
                           + in2 * out2 * w2.dtype.itemsize
                           + out2 * 4
                           + n_pad * out2 * 4),
    )

    kernel = functools.partial(_wire_kernel, out_pad=out_pad,
                               omega0=float(omega0),
                               sigma0_sq=float(sigma0) * float(sigma0))

    # NOTE: for very wide hidden layers (weight planes approaching VMEM capacity),
    # add an output-column grid axis so only a weight slab is VMEM-resident.
    out = pl.pallas_call(
        kernel,
        grid=(num_tiles,),
        out_shape=jax.ShapeDtypeStruct((n_pad, out2), jnp.float32),
        in_specs=[
            pl.BlockSpec((tm_eff, in2), lambda i: (i, 0)),    # x rows tiled
            pl.BlockSpec((in2, out2), lambda i: (0, 0)),      # weights resident
            pl.BlockSpec((1, out2), lambda i: (0, 0)),        # bias resident
        ],
        out_specs=pl.BlockSpec((tm_eff, out2), lambda i: (i, 0)),  # packed [re|im]
        compiler_params=pltpu.CompilerParams(
            dimension_semantics=("parallel",),
            vmem_limit_bytes=vmem_limit),
        cost_estimate=cost,
    )(x2, w2, b2)

    return out[:n] if n_pad != n else out


@functools.partial(jax.jit, static_argnames=("omega0", "sigma0", "tm", "bf16_matmul"))
def complex_wire_pallas(x, weight, bias, *, omega0=OMEGA0, sigma0=SIGMA0,
                        tm=1024, bf16_matmul=True):
    """One-shot convenience wrapper: complex64 in / complex64 out.  jit-ed so the
    pack / pad / slice / recombine host passes fuse into one XLA program; for
    stacked layers prefer pack_wire_weights + complex_wire_planes directly."""
    n, in_size = x.shape
    out_size = weight.shape[0]
    xdt = jnp.bfloat16 if bf16_matmul else jnp.float32
    x2 = jnp.concatenate([jnp.real(x), jnp.imag(x)], axis=1).astype(xdt)   # (N, 2*IN)
    w2, b2, out_pad = pack_wire_weights(weight, bias, bf16_matmul=bf16_matmul)
    out2 = complex_wire_planes(x2, w2, b2, omega0=omega0, sigma0=sigma0, tm=tm)
    return lax.complex(out2[:, :out_size], out2[:, out_pad:out_pad + out_size])


def complex_wire_ref(x, weight, bias, omega0=OMEGA0, sigma0=SIGMA0):
    """Pure-JAX reference mirroring the PyTorch forward."""
    lin = x @ weight.T + bias
    return jnp.exp(1j * (omega0 * lin) - jnp.square(jnp.abs(sigma0 * lin)))


if __name__ == "__main__":
    # Small shapes consistent with nn.Linear(in_size, out_size): batch=8, in=32, out=32.
    N, IN, OUT = 8, 32, 32

    key = jax.random.PRNGKey(0)
    k1, k2, k3, k4, k5, k6 = jax.random.split(key, 6)

    w = ((jax.random.normal(k1, (OUT, IN), jnp.float32)
          + 1j * jax.random.normal(k2, (OUT, IN), jnp.float32)) * (1.0 / IN)
         ).astype(jnp.complex64)
    b = ((jax.random.normal(k3, (OUT,), jnp.float32)
          + 1j * jax.random.normal(k4, (OUT,), jnp.float32)) * 0.01
         ).astype(jnp.complex64)
    x = ((jax.random.normal(k5, (N, IN), jnp.float32)
          + 1j * jax.random.normal(k6, (N, IN), jnp.float32)) * 0.1
         ).astype(jnp.complex64)

    ref = complex_wire_ref(x, w, b)

    # f32 MXU-operand path: tight tolerance against the complex reference.
    out_f32 = complex_wire_pallas(x, w, b, bf16_matmul=False)
    jax.block_until_ready(out_f32)
    np.testing.assert_allclose(np.asarray(out_f32), np.asarray(ref),
                               rtol=1e-3, atol=1e-5)

    # Default bf16 MXU-operand path (~3x fewer MXU passes, f32 accumulation):
    # tolerance reflects the bf16 operand-rounding envelope (sigma0^2 amplifies
    # |lin|^2 error in the Gaussian term).
    out_bf16 = complex_wire_pallas(x, w, b)
    jax.block_until_ready(out_bf16)
    np.testing.assert_allclose(np.asarray(out_bf16), np.asarray(ref),
                               rtol=8e-2, atol=8e-3)

    print("KERNEL_OK")
</pallas_src>

<mosaic_0001>
module attributes {stable_mosaic.version = 11 : i64} {
  func.func @_wire_kernel(%arg0: i32, %arg1: memref<8x64xf32, #tpu.memory_space<vmem>>, %arg2: memref<64x256xf32, #tpu.memory_space<vmem>>, %arg3: memref<1x256xf32, #tpu.memory_space<vmem>>, %arg4: memref<8x256xf32, #tpu.memory_space<vmem>>) attributes {dimension_semantics = [#tpu.dimension_semantics<parallel>], iteration_bounds = array<i64: 1>, scalar_prefetch = 0 : i64, scratch_operands = 0 : i64, tpu.core_type = #tpu.core_type<tc>, window_params = [{transform_indices = @transform_0, window_bounds = array<i64: 8, 64>}, {pipeline_mode = #tpu.pipeline_mode<synchronous>, transform_indices = @transform_1, window_bounds = array<i64: 64, 256>}, {pipeline_mode = #tpu.pipeline_mode<synchronous>, transform_indices = @transform_2, window_bounds = array<i64: 1, 256>}, {transform_indices = @transform_3, window_bounds = array<i64: 8, 256>}]} {
    %c0 = arith.constant 0 : index
    %c0_0 = arith.constant 0 : index
    %0 = vector.load %arg1[%c0, %c0_0] : memref<8x64xf32, #tpu.memory_space<vmem>>, vector<8x64xf32>
    %c0_1 = arith.constant 0 : index
    %c0_2 = arith.constant 0 : index
    %1 = vector.load %arg2[%c0_1, %c0_2] : memref<64x256xf32, #tpu.memory_space<vmem>>, vector<64x256xf32>
    %cst = arith.constant dense<0.000000e+00> : vector<8x256xf32>
    %2 = tpu.matmul %0, %1, %cst {dimension_numbers = #tpu.dot_dimension_numbers<[1], [0], [0], [1], [0, 0, 1, 1], [], []>} : vector<8x64xf32>, vector<64x256xf32>, vector<8x256xf32> -> vector<8x256xf32>
    %c0_3 = arith.constant 0 : index
    %c0_4 = arith.constant 0 : index
    %3 = vector.load %arg3[%c0_3, %c0_4] : memref<1x256xf32, #tpu.memory_space<vmem>>, vector<1x256xf32>
    %4 = vector.broadcast %3 : vector<1x256xf32> to vector<8x256xf32>
    %5 = arith.addf %2, %4 : vector<8x256xf32>
    %6 = vector.extract_strided_slice %5 {offsets = [0, 0], sizes = [8, 128], strides = [1, 1]} : vector<8x256xf32> to vector<8x128xf32>
    %7 = vector.extract_strided_slice %5 {offsets = [0, 128], sizes = [8, 128], strides = [1, 1]} : vector<8x256xf32> to vector<8x128xf32>
    %8 = arith.mulf %6, %6 : vector<8x128xf32>
    %9 = arith.mulf %7, %7 : vector<8x128xf32>
    %10 = arith.addf %8, %9 : vector<8x128xf32>
    %cst_5 = arith.constant -1.000000e+01 : f32
    %11 = vector.broadcast %cst_5 : f32 to vector<8x128xf32>
    %12 = arith.mulf %11, %7 : vector<8x128xf32>
    %cst_6 = arith.constant 1.600000e+03 : f32
    %13 = vector.broadcast %cst_6 : f32 to vector<8x128xf32>
    %14 = arith.mulf %13, %10 : vector<8x128xf32>
    %15 = arith.subf %12, %14 : vector<8x128xf32>
    %16 = math.exp %15 : vector<8x128xf32>
    %cst_7 = arith.constant 1.000000e+01 : f32
    %17 = vector.broadcast %cst_7 : f32 to vector<8x128xf32>
    %18 = arith.mulf %17, %6 : vector<8x128xf32>
    %cst_8 = arith.constant 0.636619746 : f32
    %19 = vector.broadcast %cst_8 : f32 to vector<8x128xf32>
    %20 = arith.mulf %18, %19 : vector<8x128xf32>
    %cst_9 = arith.constant 5.000000e-01 : f32
    %21 = vector.broadcast %cst_9 : f32 to vector<8x128xf32>
    %22 = arith.addf %20, %21 : vector<8x128xf32>
    %23 = math.floor %22 : vector<8x128xf32>
    %24 = arith.fptosi %23 : vector<8x128xf32> to vector<8x128xi32>
    %cst_10 = arith.constant 1.5703125 : f32
    %25 = vector.broadcast %cst_10 : f32 to vector<8x128xf32>
    %26 = arith.mulf %23, %25 : vector<8x128xf32>
    %27 = arith.subf %18, %26 : vector<8x128xf32>
    %cst_11 = arith.constant 4.83751297E-4 : f32
    %28 = vector.broadcast %cst_11 : f32 to vector<8x128xf32>
    %29 = arith.mulf %23, %28 : vector<8x128xf32>
    %30 = arith.subf %27, %29 : vector<8x128xf32>
    %cst_12 = arith.constant 7.549790e-08 : f32
    %31 = vector.broadcast %cst_12 : f32 to vector<8x128xf32>
    %32 = arith.mulf %23, %31 : vector<8x128xf32>
    %33 = arith.subf %30, %32 : vector<8x128xf32>
    %34 = arith.mulf %33, %33 : vector<8x128xf32>
    %35 = arith.mulf %33, %34 : vector<8x128xf32>
    %cst_13 = arith.constant -1.95152956E-4 : f32
    %36 = vector.broadcast %cst_13 : f32 to vector<8x128xf32>
    %37 = arith.mulf %34, %36 : vector<8x128xf32>
    %cst_14 = arith.constant 0.00833216123 : f32
    %38 = vector.broadcast %cst_14 : f32 to vector<8x128xf32>
    %39 = arith.addf %38, %37 : vector<8x128xf32>
    %40 = arith.mulf %34, %39 : vector<8x128xf32>
    %cst_15 = arith.constant -0.166666552 : f32
    %41 = vector.broadcast %cst_15 : f32 to vector<8x128xf32>
    %42 = arith.addf %41, %40 : vector<8x128xf32>
    %43 = arith.mulf %35, %42 : vector<8x128xf32>
    %44 = arith.addf %33, %43 : vector<8x128xf32>
    %cst_16 = arith.constant 5.000000e-01 : f32
    %45 = vector.broadcast %cst_16 : f32 to vector<8x128xf32>
    %46 = arith.mulf %45, %34 : vector<8x128xf32>
    %cst_17 = arith.constant 1.000000e+00 : f32
    %47 = vector.broadcast %cst_17 : f32 to vector<8x128xf32>
    %48 = arith.subf %47, %46 : vector<8x128xf32>
    %49 = arith.mulf %34, %34 : vector<8x128xf32>
    %cst_18 = arith.constant 2.44331568E-5 : f32
    %50 = vector.broadcast %cst_18 : f32 to vector<8x128xf32>
    %51 = arith.mulf %34, %50 : vector<8x128xf32>
    %cst_19 = arith.constant -0.00138873165 : f32
    %52 = vector.broadcast %cst_19 : f32 to vector<8x128xf32>
    %53 = arith.addf %52, %51 : vector<8x128xf32>
    %54 = arith.mulf %34, %53 : vector<8x128xf32>
    %cst_20 = arith.constant 0.0416666456 : f32
    %55 = vector.broadcast %cst_20 : f32 to vector<8x128xf32>
    %56 = arith.addf %55, %54 : vector<8x128xf32>
    %57 = arith.mulf %49, %56 : vector<8x128xf32>
    %58 = arith.addf %48, %57 : vector<8x128xf32>
    %c1_i32 = arith.constant 1 : i32
    %59 = vector.broadcast %c1_i32 : i32 to vector<8x128xi32>
    %60 = arith.andi %24, %59 : vector<8x128xi32>
    %c1_i32_21 = arith.constant 1 : i32
    %61 = vector.broadcast %c1_i32_21 : i32 to vector<8x128xi32>
    %62 = arith.cmpi eq, %60, %61 : vector<8x128xi32>
    %63 = arith.select %62, %58, %44 : vector<8x128xi1>, vector<8x128xf32>
    %64 = arith.select %62, %44, %58 : vector<8x128xi1>, vector<8x128xf32>
    %c2_i32 = arith.constant 2 : i32
    %65 = vector.broadcast %c2_i32 : i32 to vector<8x128xi32>
    %66 = arith.andi %24, %65 : vector<8x128xi32>
    %c2_i32_22 = arith.constant 2 : i32
    %67 = vector.broadcast %c2_i32_22 : i32 to vector<8x128xi32>
    %68 = arith.cmpi eq, %66, %67 : vector<8x128xi32>
    %cst_23 = arith.constant 0.000000e+00 : f32
    %69 = vector.broadcast %cst_23 : f32 to vector<8x128xf32>
    %70 = arith.subf %69, %63 : vector<8x128xf32>
    %71 = arith.select %68, %70, %63 : vector<8x128xi1>, vector<8x128xf32>
    %c1_i32_24 = arith.constant 1 : i32
    %72 = vector.broadcast %c1_i32_24 : i32 to vector<8x128xi32>
    %73 = arith.addi %24, %72 : vector<8x128xi32>
    %c2_i32_25 = arith.constant 2 : i32
    %74 = vector.broadcast %c2_i32_25 : i32 to vector<8x128xi32>
    %75 = arith.andi %73, %74 : vector<8x128xi32>
    %c2_i32_26 = arith.constant 2 : i32
    %76 = vector.broadcast %c2_i32_26 : i32 to vector<8x128xi32>
    %77 = arith.cmpi eq, %75, %76 : vector<8x128xi32>
    %cst_27 = arith.constant 0.000000e+00 : f32
    %78 = vector.broadcast %cst_27 : f32 to vector<8x128xf32>
    %79 = arith.subf %78, %64 : vector<8x128xf32>
    %80 = arith.select %77, %79, %64 : vector<8x128xi1>, vector<8x128xf32>
    %81 = arith.mulf %16, %80 : vector<8x128xf32>
    %c0_28 = arith.constant 0 : index
    %c0_29 = arith.constant 0 : index
    %82 = vector.load %arg4[%c0_28, %c0_29] : memref<8x256xf32, #tpu.memory_space<vmem>>, vector<8x128xf32>
    tpu.vector_store %arg4[%c0_28, %c0_29], %81 {strides = array<i32>} : memref<8x256xf32, #tpu.memory_space<vmem>>, vector<8x128xf32>,
    %83 = arith.mulf %16, %71 : vector<8x128xf32>
    %c0_30 = arith.constant 0 : index
    %c128 = arith.constant 128 : index
    %84 = vector.load %arg4[%c0_30, %c128] : memref<8x256xf32, #tpu.memory_space<vmem>>, vector<8x128xf32>
    tpu.vector_store %arg4[%c0_30, %c128], %83 {strides = array<i32>} : memref<8x256xf32, #tpu.memory_space<vmem>>, vector<8x128xf32>,
    return
  }
  func.func @transform_0(%arg0: i32) -> (i32, i32) {
    %c0_i32 = arith.constant 0 : i32
    %c0_i32_0 = arith.constant 0 : i32
    return %arg0, %c0_i32 : i32, i32
  }
  func.func @transform_1(%arg0: i32) -> (i32, i32) {
    %c0_i32 = arith.constant 0 : i32
    %c0_i32_0 = arith.constant 0 : i32
    %c0_i32_1 = arith.constant 0 : i32
    return %c0_i32, %c0_i32_0 : i32, i32
  }
  func.func @transform_2(%arg0: i32) -> (i32, i32) {
    %c0_i32 = arith.constant 0 : i32
    %c0_i32_0 = arith.constant 0 : i32
    %c0_i32_1 = arith.constant 0 : i32
    return %c0_i32, %c0_i32_0 : i32, i32
  }
  func.func @transform_3(%arg0: i32) -> (i32, i32) {
    %c0_i32 = arith.constant 0 : i32
    %c0_i32_0 = arith.constant 0 : i32
    return %arg0, %c0_i32 : i32, i32
  }
}

</mosaic_0001>

<bundles_post_ra>
// kernel: custom-call.2
= control target key start
LH: loop header
LB: loop body
LE: loop exit
PB: predicated region body
PF: predicated region fallthrough
CT: control target
= control target key end

     0   :  { %s56_s0 = inlined_call_operand.vmem [shape: c64[32,32], index: 0, kind: input, shape index: {}]   ;;  %s57_s1 = inlined_call_operand.vmem [shape: f32[32,32], index: 1, kind: output, shape index: {}]  }
   0x1   :  { %v2_v0 = vld [vmem:[%s56_s0] sm:$0xff]  ;;  %v16_v1 = vld [vmem:[%s56_s0 + $0x8] sm:$0xff]  ;;  %v18_v2 = vld [vmem:[%s56_s0 + $0x10] sm:$0xff] }
   0x2   :  { %3 = vst [vmem:[%s57_s1] sm:$0xff] %v2_v0  ;;  %17 = vst [vmem:[%s57_s1 + $0x8] sm:$0xff] %v16_v1  ;;  %v20_v3 = vld [vmem:[%s56_s0 + $0x18] sm:$0xff] }
   0x3   :  { %19 = vst [vmem:[%s57_s1 + $0x10] sm:$0xff] %v18_v2  ;;  %21 = vst [vmem:[%s57_s1 + $0x18] sm:$0xff] %v20_v3 }

// kernel: custom-call.3
= control target key start
LH: loop header
LB: loop body
LE: loop exit
PB: predicated region body
PF: predicated region fallthrough
CT: control target
= control target key end

     0   :  { %s61_s0 = inlined_call_operand.vmem [shape: c64[32,32], index: 0, kind: input, shape index: {}]   ;;  %s62_s1 = inlined_call_operand.vmem [shape: f32[32,32], index: 1, kind: output, shape index: {}]  }
   0x1   :  { %v20_v0 = vld [vmem:[%s61_s0 + $0x20] sm:$0xff]  ;;  %v21_v1 = vld [vmem:[%s61_s0 + $0x28] sm:$0xff]  ;;  %v23_v2 = vld [vmem:[%s61_s0 + $0x30] sm:$0xff] }
   0x2   :  { %4 = vst [vmem:[%s62_s1] sm:$0xff] %v20_v0  ;;  %22 = vst [vmem:[%s62_s1 + $0x8] sm:$0xff] %v21_v1  ;;  %v25_v3 = vld [vmem:[%s61_s0 + $0x38] sm:$0xff] }
   0x3   :  { %24 = vst [vmem:[%s62_s1 + $0x10] sm:$0xff] %v23_v2  ;;  %26 = vst [vmem:[%s62_s1 + $0x18] sm:$0xff] %v25_v3 }

// kernel: custom-call
= control target key start
LH: loop header
LB: loop body
LE: loop exit
PB: predicated region body
PF: predicated region fallthrough
CT: control target
= control target key end

     0   :  { %2 = vsyncpa [#allocation0], 0  ;;  %s61_s0 = inlined_call_operand.hbm [shape: c64[8,32], index: 0, kind: input, shape index: {}]   ;;  %s62_s1 = inlined_call_operand.vmem [shape: f32[8,32], index: 1, kind: output, shape index: {}]  }
   0x1   :  { %s3_s8 = sshll.u32 %s62_s1, 4  ;;  %s9_s11 = scalar_lea.hbm %s61_s0, 128  ;;  %s4_s8 = int_to_ptr.vmem [resolvable:$true] %s3_s8 }
   0x2   :  { %p10_p0 = scmp.ne.s32.totalorder %s61_s0, %s9_s11  ;;  %s11_s16 = scalar_lea.hbm %s61_s0, 256 }
   0x3   :  { %p12_p1 = scmp.lt.u32.totalorder %s11_s16, %s9_s11  ;;  %p13_p2 = scmp.lt.u32.totalorder %s9_s11, %s61_s0 }
   0x5   :  { %p14_p3 = por %p13_p2, %p12_p1 }
   0x7   :  { %p15_p4 = pnand %p14_p3, %p10_p0 }
   0x9   :  { %18 = shalt.err (!%p15_p4)  }
   0xa   :  { %s19_s1 = scalar_lea.vmem %s4_s8, 128  ;;  %p24_p6 = scmp.lt.s32.totalorder %s4_s8, %s4_s8 }
   0xb   :  { %p20_p5 = scmp.ne.s32.totalorder %s4_s8, %s19_s1  ;;  %p25_p7 = scmp.lt.s32.totalorder %s19_s1, %s19_s1 }
   0xd   :  { %p26_p8 = por %p25_p7, %p24_p6 }
   0xf   :  { %p27_p9 = pnand %p26_p8, %p20_p5 }
  0x11   :  { %30 = shalt.err (!%p27_p9)  }
  0x12   :  { %6 = dma.hbm_to_vmem [thread:$0]  %s61_s0, 128, %s4_s8, [#allocation0] }
  0x13   :  { %31 = dma.done.wait [#allocation0], 128  }
  0x14   :  { %32 = vsyncadd [#allocation0], 4294967168 }
  0x15   :  { %8 = vsyncpa [#allocation0], 1 }

// kernel: custom-call.1
= control target key start
LH: loop header
LB: loop body
LE: loop exit
PB: predicated region body
PF: predicated region fallthrough
CT: control target
= control target key end

     0   :  { %s59_s0 = inlined_call_operand.hbm [shape: c64[8,32], index: 0, kind: input, shape index: {}]   ;;  %s60_s1 = inlined_call_operand.vmem [shape: f32[8,32], index: 1, kind: output, shape index: {}]  }
   0x1   :  { %s2_s8 = scalar_lea.hbm %s59_s0, 128 }
   0x2   :  { %3 = vsyncpa [#allocation0], 0  ;;  %s4_s11 = sshll.u32 %s60_s1, 4  ;;  %s34_s14 = scalar_lea.hbm %s59_s0, 256  ;;  %s5_s11 = int_to_ptr.vmem [resolvable:$true] %s4_s11 }
   0x3   :  { %p11_p0 = scmp.ne.s32.totalorder %s2_s8, %s34_s14  ;;  %p13_p1 = scmp.lt.u32.totalorder %s2_s8, %s59_s0 }
   0x4   :  { %p14_p2 = scmp.lt.u32.totalorder %s34_s14, %s34_s14  ;;  %p16_p4 = scmp.lt.u32.totalorder %s34_s14, %s2_s8 }
   0x6   :  { %p15_p3 = por %p14_p2, %p13_p1 }
   0x8   :  { %p17_p5 = por %p16_p4, %p15_p3 }
   0xa   :  { %p18_p6 = pnand %p17_p5, %p11_p0 }
   0xc   :  { %21 = shalt.err (!%p18_p6)  }
   0xd   :  { %s22_s17 = scalar_lea.vmem %s5_s11, 128  ;;  %p27_p8 = scmp.lt.s32.totalorder %s5_s11, %s5_s11 }
   0xe   :  { %p23_p7 = scmp.ne.s32.totalorder %s5_s11, %s22_s17  ;;  %p28_p9 = scmp.lt.s32.totalorder %s22_s17, %s22_s17 }
  0x10   :  { %p29_p10 = por %p28_p9, %p27_p8 }
  0x12   :  { %p30_p11 = pnand %p29_p10, %p23_p7 }
  0x14   :  { %33 = shalt.err (!%p30_p11)  }
  0x15   :  { %7 = dma.hbm_to_vmem [thread:$0]  %s2_s8, 128, %s5_s11, [#allocation0] }
  0x16   :  { %35 = dma.done.wait [#allocation0], 128  }
  0x17   :  { %36 = vsyncadd [#allocation0], 4294967168 }
  0x18   :  { %9 = vsyncpa [#allocation0], 1 }

// kernel: custom-call.4
= control target key start
LH: loop header
LB: loop body
LE: loop exit
PB: predicated region body
PF: predicated region fallthrough
CT: control target
= control target key end

     0   :  { %2 = vsyncpa [#allocation0], 0  ;;  %s61_s0 = inlined_call_operand.hbm [shape: c64[32], index: 0, kind: input, shape index: {}]   ;;  %s62_s1 = inlined_call_operand.vmem [shape: f32[32], index: 1, kind: output, shape index: {}]  }
   0x1   :  { %s3_s8 = sshll.u32 %s62_s1, 4  ;;  %s9_s11 = scalar_lea.hbm %s61_s0, 16  ;;  %s4_s8 = int_to_ptr.vmem [resolvable:$true] %s3_s8 }
   0x2   :  { %p10_p0 = scmp.ne.s32.totalorder %s61_s0, %s9_s11  ;;  %s11_s16 = scalar_lea.hbm %s61_s0, 32 }
   0x3   :  { %p12_p1 = scmp.lt.u32.totalorder %s11_s16, %s9_s11  ;;  %p13_p2 = scmp.lt.u32.totalorder %s9_s11, %s61_s0 }
   0x5   :  { %p14_p3 = por %p13_p2, %p12_p1 }
   0x7   :  { %p15_p4 = pnand %p14_p3, %p10_p0 }
   0x9   :  { %18 = shalt.err (!%p15_p4)  }
   0xa   :  { %s19_s1 = scalar_lea.vmem %s4_s8, 16  ;;  %p24_p6 = scmp.lt.s32.totalorder %s4_s8, %s4_s8 }
   0xb   :  { %p20_p5 = scmp.ne.s32.totalorder %s4_s8, %s19_s1  ;;  %p25_p7 = scmp.lt.s32.totalorder %s19_s1, %s19_s1 }
   0xd   :  { %p26_p8 = por %p25_p7, %p24_p6 }
   0xf   :  { %p27_p9 = pnand %p26_p8, %p20_p5 }
  0x11   :  { %30 = shalt.err (!%p27_p9)  }
  0x12   :  { %6 = dma.hbm_to_vmem [thread:$0]  %s61_s0, 16, %s4_s8, [#allocation0] }
  0x13   :  { %31 = dma.done.wait [#allocation0], 16  }
  0x14   :  { %32 = vsyncadd [#allocation0], 4294967280 }
  0x15   :  { %8 = vsyncpa [#allocation0], 1 }

// kernel: custom-call.5
= control target key start
LH: loop header
LB: loop body
LE: loop exit
PB: predicated region body
PF: predicated region fallthrough
CT: control target
= control target key end

     0   :  { %s59_s0 = inlined_call_operand.hbm [shape: c64[32], index: 0, kind: input, shape index: {}]   ;;  %s60_s1 = inlined_call_operand.vmem [shape: f32[32], index: 1, kind: output, shape index: {}]  }
   0x1   :  { %s2_s8 = scalar_lea.hbm %s59_s0, 16 }
   0x2   :  { %3 = vsyncpa [#allocation0], 0  ;;  %s4_s11 = sshll.u32 %s60_s1, 4  ;;  %s34_s14 = scalar_lea.hbm %s59_s0, 32  ;;  %s5_s11 = int_to_ptr.vmem [resolvable:$true] %s4_s11 }
   0x3   :  { %p11_p0 = scmp.ne.s32.totalorder %s2_s8, %s34_s14  ;;  %p13_p1 = scmp.lt.u32.totalorder %s2_s8, %s59_s0 }
   0x4   :  { %p14_p2 = scmp.lt.u32.totalorder %s34_s14, %s34_s14  ;;  %p16_p4 = scmp.lt.u32.totalorder %s34_s14, %s2_s8 }
   0x6   :  { %p15_p3 = por %p14_p2, %p13_p1 }
   0x8   :  { %p17_p5 = por %p16_p4, %p15_p3 }
   0xa   :  { %p18_p6 = pnand %p17_p5, %p11_p0 }
   0xc   :  { %21 = shalt.err (!%p18_p6)  }
   0xd   :  { %s22_s17 = scalar_lea.vmem %s5_s11, 16  ;;  %p27_p8 = scmp.lt.s32.totalorder %s5_s11, %s5_s11 }
   0xe   :  { %p23_p7 = scmp.ne.s32.totalorder %s5_s11, %s22_s17  ;;  %p28_p9 = scmp.lt.s32.totalorder %s22_s17, %s22_s17 }
  0x10   :  { %p29_p10 = por %p28_p9, %p27_p8 }
  0x12   :  { %p30_p11 = pnand %p29_p10, %p23_p7 }
  0x14   :  { %33 = shalt.err (!%p30_p11)  }
  0x15   :  { %7 = dma.hbm_to_vmem [thread:$0]  %s2_s8, 16, %s5_s11, [#allocation0] }
  0x16   :  { %35 = dma.done.wait [#allocation0], 16  }
  0x17   :  { %36 = vsyncadd [#allocation0], 4294967280 }
  0x18   :  { %9 = vsyncpa [#allocation0], 1 }

// kernel: custom-call.6
= control target key start
LH: loop header
LB: loop body
LE: loop exit
PB: predicated region body
PF: predicated region fallthrough
CT: control target
= control target key end

     0   :  { %s126_s0 = inlined_call_operand.vmem [shape: f32[8,32], index: 0, kind: input, shape index: {}]   ;;  %s127_s1 = inlined_call_operand.vmem [shape: f32[8,32], index: 1, kind: input, shape index: {}]   ;;  %s128_s2 = inlined_call_operand.hbm [shape: c64[8,32], index: 2, kind: output, shape index: {}]  }
   0x1   :  { %s87_s11 = scalar_lea.hbm %s128_s2, 128 }
   0x2   :  { %4 = vsyncpa [#allocation0], 0  ;;  %s5_s14 = sshll.u32 %s126_s0, 4  ;;  %s6_s14 = int_to_ptr.vmem [resolvable:$true] %s5_s14 }
   0x3   :  { %s18_s15 = scalar_lea.vmem %s6_s14, 128  ;;  %p23_p1 = scmp.lt.s32.totalorder %s6_s14, %s6_s14 }
   0x4   :  { %p19_p0 = scmp.ne.s32.totalorder %s6_s14, %s18_s15  ;;  %p24_p2 = scmp.lt.s32.totalorder %s18_s15, %s18_s15 }
   0x6   :  { %p25_p3 = por %p24_p2, %p23_p1 }
   0x8   :  { %p26_p4 = pnand %p25_p3, %p19_p0 }
   0xa   :  { %29 = shalt.err (!%p26_p4)  }
   0xb   :  { %p31_p5 = scmp.ne.s32.totalorder %s128_s2, %s87_s11  ;;  %s32_s0 = scalar_lea.hbm %s128_s2, 256 }
   0xc   :  { %p33_p6 = scmp.lt.u32.totalorder %s32_s0, %s87_s11  ;;  %p34_p7 = scmp.lt.u32.totalorder %s87_s11, %s128_s2 }
   0xe   :  { %p35_p8 = por %p34_p7, %p33_p6 }
  0x10   :  { %p36_p9 = pnand %p35_p8, %p31_p5 }
  0x12   :  { %39 = shalt.err (!%p36_p9)  }
  0x13   :  { %8 = dma.vmem_to_hbm [thread:$0]  %s6_s14, 128, %s128_s2, [#allocation0] }
  0x14   :  { %65 = dma.done.wait [#allocation0], 128  }
  0x15   :  { %66 = vsyncadd [#allocation0], 4294967168 }
  0x16   :  { %10 = vsyncpa [#allocation0], 1 }
  0x17   :  { %11 = vsyncpa [#allocation1], 0  ;;  %s12_s28 = sshll.u32 %s127_s1, 4  ;;  %s13_s28 = int_to_ptr.vmem [resolvable:$true] %s12_s28 }
  0x18   :  { %s40_s29 = scalar_lea.vmem %s13_s28, 128  ;;  %p45_p11 = scmp.lt.s32.totalorder %s13_s28, %s13_s28 }
  0x19   :  { %p41_p10 = scmp.ne.s32.totalorder %s13_s28, %s40_s29  ;;  %p46_p12 = scmp.lt.s32.totalorder %s40_s29, %s40_s29 }
  0x1b   :  { %p47_p13 = por %p46_p12, %p45_p11 }
  0x1d   :  { %p48_p0 = pnand %p47_p13, %p41_p10 }
  0x1f   :  { %51 = shalt.err (!%p48_p0)  }
  0x20   :  { %p53_p1 = scmp.ne.s32.totalorder %s87_s11, %s32_s0  ;;  %p56_p2 = scmp.lt.u32.totalorder %s32_s0, %s32_s0 }
  0x22   :  { %p57_p3 = por %p56_p2, %p34_p7 }
  0x24   :  { %p59_p4 = por %p57_p3, %p33_p6 }
  0x26   :  { %p60_p5 = pnand %p59_p4, %p53_p1 }
  0x28   :  { %63 = shalt.err (!%p60_p5)  }
  0x29   :  { %15 = dma.vmem_to_hbm [thread:$0]  %s13_s28, 128, %s87_s11, [#allocation1] }
  0x2a   :  { %67 = dma.done.wait [#allocation1], 128  }
  0x2b   :  { %68 = vsyncadd [#allocation1], 4294967168 }
  0x2c   :  { %17 = vsyncpa [#allocation1], 1 }

// kernel: complex_wire_pallas.1
= control target key start
LH: loop header
LB: loop body
LE: loop exit
PB: predicated region body
PF: predicated region fallthrough
CT: control target
= control target key end

     0   :  { %v197_v3 = vmov 0.0   ;;  %vm43_vm0 = vcmask 523264   ;;  %v33_v26 = vlaneseq  ;;  %s278_s1 = inlined_call_operand.vmem [shape: f32[64,256], index: 1, kind: input, shape index: {}]   ;;  %s279_s0 = inlined_call_operand.vmem [shape: f32[8,64], index: 0, kind: input, shape index: {}]   ;;  %s280_s2 = inlined_call_operand.vmem [shape: f32[1,256], index: 2, kind: input, shape index: {}]   ;;  %s281_s3 = inlined_call_operand.vmem [shape: f32[8,256], index: 3, kind: output, shape index: {}]  }
   0x1   :  { %v16_v0 = vld [vmem:[%s278_s1 + $0x8] sm:$0xff]  ;;  %v18_v1 = vld [vmem:[%s278_s1 + $0x18] sm:$0xff]  ;;  %v15_v2 = vld [vmem:[%s278_s1] sm:$0xff]  ;;  %111 = vmatprep.mubr.f32.mxu0 %v197_v3 }
   0x2   :  { %v176_v4 = vpack.c.bf16 %v18_v1, %v16_v0  ;;  %v17_v5 = vld [vmem:[%s278_s1 + $0x10] sm:$0xff]  ;;  %v20_v6 = vld [vmem:[%s278_s1 + $0x28] sm:$0xff]  ;;  %v22_v7 = vld [vmem:[%s278_s1 + $0x38] sm:$0xff]  ;;  %v34_v27 = vshrl.u32 %v33_v26, 7 }
   0x3   :  { %v178_v8 = vpack.c.bf16 %v17_v5, %v15_v2  ;;  %v180_v9 = vpack.c.bf16 %v22_v7, %v20_v6  ;;  %v19_v10 = vld [vmem:[%s278_s1 + $0x20] sm:$0xff]  ;;  %v21_v11 = vld [vmem:[%s278_s1 + $0x30] sm:$0xff]  ;;  %v24_v12 = vld [vmem:[%s278_s1 + $0x48] sm:$0xff] }
   0x4   :  { %177 = vmatprep.subr.bf16.mxu0 %v176_v4  ;;  %v26_v13 = vld [vmem:[%s278_s1 + $0x58] sm:$0xff]  ;;  %v182_v14 = vpack.c.bf16 %v21_v11, %v19_v10  ;;  %v23_v16 = vld [vmem:[%s278_s1 + $0x40] sm:$0xff]  ;;  %v25_v17 = vld [vmem:[%s278_s1 + $0x50] sm:$0xff]  ;;  %v35_v28 = vsub.s32 0, %v34_v27  ;;  %v39_v30 = vsub.s32 1, %v34_v27 }
   0x5   :  { %179 = vmatpush1.bf16.msra.mxu0 %v178_v8  ;;  %v184_v15 = vpack.c.bf16 %v26_v13, %v24_v12  ;;  %v28_v18 = vld [vmem:[%s278_s1 + $0x68] sm:$0xff]  ;;  %v30_v19 = vld [vmem:[%s278_s1 + $0x78] sm:$0xff]  ;;  %v186_v20 = vpack.c.bf16 %v25_v17, %v23_v16  ;;  %v27_v22 = vld [vmem:[%s278_s1 + $0x60] sm:$0xff] }
   0x6   :  { %181 = vmatprep.subr.bf16.mxu0 %v180_v9  ;;  %v188_v21 = vpack.c.bf16 %v30_v19, %v28_v18  ;;  %v29_v23 = vld [vmem:[%s278_s1 + $0x70] sm:$0xff]  ;;  %v14_v25 = vld [vmem:[%s279_s0] sm:$0xff] }
   0x7   :  { %v190_v24 = vpack.c.bf16 %v29_v23, %v27_v22  ;;  %v31_v29 = vld [vmem:[%s280_s2] sm:$0x3] }
   0x8   :  { %v36_v31 = vrot.slane %v31_v29, %v35_v28  ;;  %v40_v32 = vrot.slane %v31_v29, %v39_v30 }
   0x9   :  { %183 = vmatpush1.bf16.msra.mxu0 %v182_v14 }
   0xa   :  { %185 = vmatprep.subr.bf16.mxu0 %v184_v15 }
   0xd   :  { %187 = vmatpush1.bf16.msra.mxu0 %v186_v20 }
   0xe   :  { %189 = vmatprep.subr.bf16.mxu0 %v188_v21 }
  0x11   :  { %191 = vmatpush1.bf16.msra.mxu0 %v190_v24 }
  0x14   :  { %175 = vmatmul.mubr.msk.f32.vlgmr.msra.gmra.mrb[0].mxu0 %vm43_vm0, %v14_v25 }
  0xe7   :  { %v113_v33 = vpop.f32.mrb[0].mxu0 }
  0xe8   :  { %v114_v34 = vadd.f32 %v113_v33, %v36_v31  ;;  %v115_v35 = vpop.f32.mrb[1].mxu0 }
  0xe9   :  { %v116_v36 = vadd.f32 %v115_v35, %v40_v32 }
  0xea   :  { %v118_v37 = vmul.f32 %v114_v34, %v114_v34  ;;  %v126_v38 = vmul.f32 10.0, %v114_v34 }
  0xeb   :  { %v119_v39 = vmul.f32 %v116_v36, %v116_v36  ;;  %v121_v43 = vmul.f32 -10.0, %v116_v36 }
  0xec   :  { %v127_v40 = vmul.f32 0.63661975, %v126_v38 }
  0xed   :  { %v120_v41 = vadd.f32 %v119_v39, %v118_v37 }
  0xee   :  { %v128_v42 = vadd.f32 0.5, %v127_v40 }
  0xef   :  { %v122_v44 = vmul.f32 1600.0, %v120_v41 }
  0xf0   :  { %v129_v45 = vfloor.f32 %v128_v42 }
  0xf1   :  { %v123_v46 = vsub.f32 %v121_v43, %v122_v44 }
  0xf2   :  { %v131_v47 = vmul.f32 1.5703125, %v129_v45  ;;  %v133_v49 = vmul.f32 0.0004837513, %v129_v45  ;;  %v135_v51 = vmul.f32 7.54979e-08, %v129_v45  ;;  %v192_v54 = vtrunc.f32 %v129_v45 }
  0xf3   :  { %v124_v58 = vmul.f32 1.442695, %v123_v46 }
  0xf4   :  { %v132_v48 = vsub.f32 %v126_v38, %v131_v47  ;;  %v193_v59 = vcvt.f32.s32 %v192_v54 }
  0xf5   :  { %195 = vpow2.f32 %v124_v58 }
  0xf6   :  { %v134_v50 = vsub.f32 %v132_v48, %v133_v49  ;;  %v162_v4 = vadd.s32 1, %v193_v59  ;;  %v154_v6 = vand.u32 1, %v193_v59  ;;  %v158_v11 = vand.u32 2, %v193_v59 }
  0xf8   :  { %v136_v52 = vsub.f32 %v134_v50, %v135_v51  ;;  %v163_v12 = vand.u32 2, %v162_v4  ;;  %vm155_vm1 = vcmp.eq.s32.totalorder %v154_v6, 1  ;;  %vm159_vm2 = vcmp.eq.s32.totalorder %v158_v11, 2 }
  0xfa   :  { %v137_v53 = vmul.f32 %v136_v52, %v136_v52  ;;  %vm164_vm3 = vcmp.eq.s32.totalorder %v163_v12, 2 }
  0xfc   :  { %v139_v55 = vmul.f32 -0.00019515296, %v137_v53  ;;  %v148_v56 = vmul.f32 2.4433157e-05, %v137_v53  ;;  %v145_v62 = vmul.f32 0.5, %v137_v53  ;;  %v138_v0 = vmul.f32 %v137_v53, %v136_v52 }
  0xfd   :  { %v147_v2 = vmul.f32 %v137_v53, %v137_v53 }
  0xfe   :  { %v140_v57 = vadd.f32 0.008332161, %v139_v55  ;;  %v149_v60 = vadd.f32 -0.0013887316, %v148_v56  ;;  %v146_v7 = vsub.f32 1.0, %v145_v62 }
  0xff   :  { %v196_v17 = vpop.eup %195 }
 0x100   :  { %v141_v61 = vmul.f32 %v140_v57, %v137_v53  ;;  %v150_v63 = vmul.f32 %v149_v60, %v137_v53 }
 0x102   :  { %v142_v1 = vadd.f32 -0.16666655, %v141_v61  ;;  %v151_v3 = vadd.f32 0.041666646, %v150_v63 }
 0x104   :  { %v143_v5 = vmul.f32 %v142_v1, %v138_v0  ;;  %v152_v8 = vmul.f32 %v151_v3, %v147_v2 }
 0x106   :  { %v144_v9 = vadd.f32 %v143_v5, %v136_v52  ;;  %v153_v10 = vadd.f32 %v152_v8, %v146_v7 }
 0x108   :  { %v156_v13 = vsel %vm155_vm1, %v153_v10, %v144_v9  ;;  %v157_v14 = vsel %vm155_vm1, %v144_v9, %v153_v10 }
 0x109   :  { %v160_v15 = vsub.f32 0.0, %v156_v13  ;;  %v165_v16 = vsub.f32 0.0, %v157_v14 }
 0x10b   :  { %v161_v18 = vsel %vm159_vm2, %v160_v15, %v156_v13  ;;  %v166_v19 = vsel %vm164_vm3, %v165_v16, %v157_v14 }
 0x10c   :  { %v167_v20 = vmul.f32 %v196_v17, %v166_v19  ;;  %v169_v21 = vmul.f32 %v196_v17, %v161_v18 }
 0x10e   :  { %168 = vst [vmem:[%s281_s3] sm:$0xff] %v167_v20  ;;  %170 = vst [vmem:[%s281_s3 + $0x8] sm:$0xff] %v169_v21 }

</bundles_post_ra>
